<compile_context>
chip_gen: v7x
topology: tpu7x:2x2x1
jax: 0.10.0
libtpu: 0.0.40
codegen_flags: <defaults>
</compile_context>

<pallas_src>
import jax
import jax.numpy as jnp
from jax.experimental import pallas as pl
from jax.experimental.pallas import tpu as pltpu


def _round_up(n, m):
    return ((n + m - 1) // m) * m


def _bilinear_ata_kernel(v_ref, at_ref, o_ref, acc_ref):
    # v_ref:   (TB, dim)     current batch tile of v
    # at_ref:  (dim, TK)     current column tile of A^T (resident if TK == dim)
    # o_ref:   (1, TB)       lane-dense output row for this batch tile
    # acc_ref: (1, TB) f32   running sum of squares across the K axis
    k = pl.program_id(1)

    @pl.when(k == 0)
    def _():
        acc_ref[...] = jnp.zeros_like(acc_ref)

    # u = v @ A^T (this K-slice).  Standard contraction -> straight to the MXU,
    # no in-kernel transpose / relayout of A.
    u = jnp.dot(v_ref[...], at_ref[...], preferred_element_type=jnp.float32)
    # Per-row ||u||^2, accumulated in f32.  Lane-dense (1, TB) layout so the
    # final store is an unmasked, lane-wide write.
    acc_ref[...] += jnp.sum(u * u, axis=-1)[None, :]

    @pl.when(k == pl.num_programs(1) - 1)
    def _():
        o_ref[...] = acc_ref[...].astype(o_ref.dtype)


def bilinear_ata(x, A):
    """x: (dim_veronese, BS), A: (dim_veronese, dim_veronese) -> (BS, 1)."""
    dim, bs = x.shape
    assert A.shape == (dim, dim)
    assert bs >= 1

    itemsize = jnp.dtype(x.dtype).itemsize
    a_itemsize = jnp.dtype(A.dtype).itemsize

    # Row-major reshape, identical to torch's x.view(BS, dim) semantics.
    v = x.reshape(bs, dim)

    # ---- batch-tile (TB) selection ------------------------------------------
    bytes_per_row = max(dim * itemsize, 1)
    # ~2 MiB of v per grid step, at least 512 rows for small dim, and at most
    # ~8 MiB per tile so double-buffering still fits v7x's 64 MiB VMEM.
    target_tb = _round_up(max((2 << 20) // bytes_per_row, 512), 8)
    target_tb = min(target_tb, max(256, ((8 << 20) // bytes_per_row) // 8 * 8))

    if bs < 8:
        # Tiny batch: pad to one 8-row tile (negligible one-time copy).
        v = jnp.pad(v, ((0, 8 - bs), (0, 0)))
        bs_eff, tb = 8, 8
    else:
        bs_eff = bs
        # Aim for >= 2 tiles when possible so both v7x TensorCores get work.
        half = _round_up(pl.cdiv(bs, 2), 8)
        tb = max(8, min(target_tb, half, (bs // 8) * 8))
    num_tiles = pl.cdiv(bs_eff, tb)   # tail tile may be partial (rows independent)

    # ---- A^T tiling (only when A no longer fits comfortably in VMEM) ---------
    at = A.T  # one-time XLA transpose; kernel then uses a standard contraction.
    if dim * dim * a_itemsize > (12 << 20):
        tk = max(128, ((4 << 20) // (dim * a_itemsize)) // 128 * 128)
        dim_pad = _round_up(dim, tk)
        if dim_pad != dim:
            # Zero columns contribute 0 to the sum of squares -> safe.
            at = jnp.pad(at, ((0, 0), (0, dim_pad - dim)))
    else:
        tk, dim_pad = dim, dim
    num_k = dim_pad // tk

    cost = pl.CostEstimate(
        flops=2 * bs_eff * dim * dim_pad + 3 * bs_eff * dim_pad,
        transcendentals=0,
        bytes_accessed=(itemsize * bs_eff * dim
                        + a_itemsize * dim * dim_pad * (num_tiles if num_k > 1 else 1)
                        + itemsize * num_tiles * tb),
    )

    # VMEM budget (itemsize-aware): double-buffered v and A^T tiles, f32 matmul
    # result, sublane-padded accumulator scratch, double-buffered output tile.
    vmem_needed = (
        2 * tb * dim * itemsize        # v tile, double-buffered
        + 2 * dim * tk * a_itemsize    # A^T tile, double-buffered
        + 4 * tb * tk                  # f32 matmul result u
        + 4 * 8 * tb                   # accumulator scratch (8-sublane padded)
        + 2 * 8 * tb * itemsize        # output tile, double-buffered
    )
    try:  # generation-aware cap (v5e/v6e: 128 MiB, v7x: 64 MiB per core)
        vmem_cap = int(pltpu.get_tpu_info().vmem_capacity_bytes)
    except Exception:
        vmem_cap = 64 << 20
    vmem_limit = int(min(max(2 * vmem_needed, 16 << 20), (3 * vmem_cap) // 4))

    # TODO(synk): optional bf16 cast of v / A^T (halves the dominant HBM stream,
    # biggest win on v5e) intentionally omitted to keep f32-exact semantics.
    out2d = pl.pallas_call(
        _bilinear_ata_kernel,
        out_shape=jax.ShapeDtypeStruct((num_tiles, tb), x.dtype),
        grid_spec=pltpu.PrefetchScalarGridSpec(
            num_scalar_prefetch=0,
            grid=(num_tiles, num_k),
            in_specs=[
                pl.BlockSpec((tb, dim), lambda i, k: (i, 0)),
                pl.BlockSpec((dim, tk), lambda i, k: (0, k)),
            ],
            out_specs=pl.BlockSpec((1, tb), lambda i, k: (i, 0)),
            scratch_shapes=[pltpu.VMEM((1, tb), jnp.float32)],
        ),
        compiler_params=pltpu.CompilerParams(
            dimension_semantics=("parallel", "arbitrary"),
            vmem_limit_bytes=vmem_limit,
        ),
        cost_estimate=cost,
    )(v, at)

    # Tail-tile garbage rows (if any) are dropped here.
    return out2d.reshape(-1)[:bs].reshape(bs, 1)


def bilinear_ata_ref(x, A):
    """Pure-JAX reference mirroring the PyTorch forward."""
    dim_veronese, bs = x.shape
    v_row = x.reshape(bs, 1, dim_veronese)
    v_col = x.reshape(bs, dim_veronese, 1)
    out = v_row @ A.T @ A @ v_col
    return out.reshape(bs, 1)


if __name__ == "__main__":
    key = jax.random.PRNGKey(0)
    k_x, k_a = jax.random.split(key)

    x_size = 32   # dim_veronese
    bs = 8

    # Deterministic parameter init: torch.rand -> uniform [0, 1)
    A = jax.random.uniform(k_a, (x_size, x_size), dtype=jnp.float32)
    # Input x: (dim_veronese, BS), as the PyTorch forward expects.
    x = jax.random.normal(k_x, (x_size, bs), dtype=jnp.float32)

    out = jax.block_until_ready(bilinear_ata(x, A))
    ref = bilinear_ata_ref(x, A)

    assert out.shape == (bs, 1)
    assert jnp.allclose(out, ref, rtol=1e-5, atol=1e-5), (out, ref)

    print("KERNEL_OK")
</pallas_src>

<mosaic_0001>
module attributes {stable_mosaic.version = 11 : i64} {
  func.func @_bilinear_ata_kernel(%arg0: i32, %arg1: i32, %arg2: memref<8x32xf32, #tpu.memory_space<vmem>>, %arg3: memref<32x32xf32, #tpu.memory_space<vmem>>, %arg4: memref<1x8xf32, #tpu.memory_space<vmem>>, %arg5: memref<1x8xf32, #tpu.memory_space<vmem>>) attributes {dimension_semantics = [#tpu.dimension_semantics<parallel>, #tpu.dimension_semantics<arbitrary>], iteration_bounds = array<i64: 1, 1>, scalar_prefetch = 0 : i64, scratch_operands = 1 : i64, tpu.core_type = #tpu.core_type<tc>, window_params = [{transform_indices = @transform_0, window_bounds = array<i64: 8, 32>}, {transform_indices = @transform_1, window_bounds = array<i64: 32, 32>}, {transform_indices = @transform_2, window_bounds = array<i64: 1, 8>}]} {
    %c0_i32 = arith.constant 0 : i32
    %0 = arith.cmpi eq, %arg1, %c0_i32 : i32
    %1 = arith.extui %0 : i1 to i32
    %c0_i32_0 = arith.constant 0 : i32
    %2 = arith.cmpi ne, %1, %c0_i32_0 : i32
    scf.if %2 {
      %cst_11 = arith.constant 0.000000e+00 : f32
      %15 = vector.broadcast %cst_11 : f32 to vector<1x8xf32>
      %c0_12 = arith.constant 0 : index
      %c0_13 = arith.constant 0 : index
      %16 = vector.load %arg5[%c0_12, %c0_13] : memref<1x8xf32, #tpu.memory_space<vmem>>, vector<1x8xf32>
      tpu.vector_store %arg5[%c0_12, %c0_13], %15 {strides = array<i32>} : memref<1x8xf32, #tpu.memory_space<vmem>>, vector<1x8xf32>,
    } else {
    }
    %c0 = arith.constant 0 : index
    %c0_1 = arith.constant 0 : index
    %3 = vector.load %arg2[%c0, %c0_1] : memref<8x32xf32, #tpu.memory_space<vmem>>, vector<8x32xf32>
    %c0_2 = arith.constant 0 : index
    %c0_3 = arith.constant 0 : index
    %4 = vector.load %arg3[%c0_2, %c0_3] : memref<32x32xf32, #tpu.memory_space<vmem>>, vector<32x32xf32>
    %cst = arith.constant dense<0.000000e+00> : vector<8x32xf32>
    %5 = tpu.matmul %3, %4, %cst {dimension_numbers = #tpu.dot_dimension_numbers<[1], [0], [0], [1], [0, 0, 1, 1], [], []>} : vector<8x32xf32>, vector<32x32xf32>, vector<8x32xf32> -> vector<8x32xf32>
    %c0_4 = arith.constant 0 : index
    %c0_5 = arith.constant 0 : index
    %6 = vector.load %arg5[%c0_4, %c0_5] : memref<1x8xf32, #tpu.memory_space<vmem>>, vector<1x8xf32>
    %7 = arith.mulf %5, %5 : vector<8x32xf32>
    %cst_6 = arith.constant dense<0.000000e+00> : vector<8xf32>
    %8 = vector.multi_reduction <add>, %7, %cst_6 [1] : vector<8x32xf32> to vector<8xf32>
    %9 = vector.shape_cast %8 : vector<8xf32> to vector<1x8xf32>
    %10 = arith.addf %6, %9 : vector<1x8xf32>
    %c0_7 = arith.constant 0 : index
    %c0_8 = arith.constant 0 : index
    %11 = vector.load %arg5[%c0_7, %c0_8] : memref<1x8xf32, #tpu.memory_space<vmem>>, vector<1x8xf32>
    tpu.vector_store %arg5[%c0_7, %c0_8], %10 {strides = array<i32>} : memref<1x8xf32, #tpu.memory_space<vmem>>, vector<1x8xf32>,
    %c0_i32_9 = arith.constant 0 : i32
    %12 = arith.cmpi eq, %arg1, %c0_i32_9 : i32
    %13 = arith.extui %12 : i1 to i32
    %c0_i32_10 = arith.constant 0 : i32
    %14 = arith.cmpi ne, %13, %c0_i32_10 : i32
    scf.if %14 {
      %c0_11 = arith.constant 0 : index
      %c0_12 = arith.constant 0 : index
      %15 = vector.load %arg5[%c0_11, %c0_12] : memref<1x8xf32, #tpu.memory_space<vmem>>, vector<1x8xf32>
      %c0_13 = arith.constant 0 : index
      %c0_14 = arith.constant 0 : index
      %16 = vector.load %arg4[%c0_13, %c0_14] : memref<1x8xf32, #tpu.memory_space<vmem>>, vector<1x8xf32>
      tpu.vector_store %arg4[%c0_13, %c0_14], %15 {strides = array<i32>} : memref<1x8xf32, #tpu.memory_space<vmem>>, vector<1x8xf32>,
    } else {
    }
    return
  }
  func.func @transform_0(%arg0: i32, %arg1: i32) -> (i32, i32) {
    %c0_i32 = arith.constant 0 : i32
    %c0_i32_0 = arith.constant 0 : i32
    return %arg0, %c0_i32 : i32, i32
  }
  func.func @transform_1(%arg0: i32, %arg1: i32) -> (i32, i32) {
    %c0_i32 = arith.constant 0 : i32
    %c0_i32_0 = arith.constant 0 : i32
    return %c0_i32, %arg1 : i32, i32
  }
  func.func @transform_2(%arg0: i32, %arg1: i32) -> (i32, i32) {
    %c0_i32 = arith.constant 0 : i32
    %c0_i32_0 = arith.constant 0 : i32
    return %arg0, %c0_i32 : i32, i32
  }
}

</mosaic_0001>

<bundles_post_ra>
// kernel: tpu_custom_call.1
= control target key start
LH: loop header
LB: loop body
LE: loop exit
PB: predicated region body
PF: predicated region fallthrough
CT: control target
= control target key end

     0   :  { %7 = vsyncpa [#allocation4], 0  ;;  %s435_s0 = inlined_call_operand.hbm [shape: f32[8,32], index: 0, kind: input, shape index: {}]   ;;  %s436_s1 = inlined_call_operand.hbm [shape: f32[32,32], index: 1, kind: input, shape index: {}]   ;;  %s437_s2 = inlined_call_operand.hbm [shape: f32[1,8], index: 2, kind: output, shape index: {}]  }
   0x1   :  { %8 = vsyncpa [#allocation7], 0 }
   0x2   :  { %9 = vsyncpa [#allocation5], 0  ;;  %s364_s9 = smov [#allocation3]   ;;  %s365_s11 = smov [#allocation6]  }
   0x3   :  { %s16_s10 = sshll.u32 %s364_s9, 4  ;;  %s25_s12 = sshll.u32 %s365_s11, 4  ;;  %s17_s10 = int_to_ptr.vmem [resolvable:$true] %s16_s10  ;;  %s389_s12 = int_to_ptr.vmem [resolvable:$true] %s25_s12 }
   0x4   :  { %s292_s15 = scalar_lea.hbm %s435_s0, 128 }
   0x5   :  { %p293_p0 = scmp.ne.s32.totalorder %s435_s0, %s292_s15  ;;  %p296_p1 = scmp.lt.u32.totalorder %s292_s15, %s435_s0 }
   0x7   :  { %p298_p2 = pnand %p296_p1, %p293_p0 }
   0x9   :  { %301 = shalt.err (!%p298_p2)
}
   0xa   :  { %s302_s20 = scalar_lea.vmem %s17_s10, 128  ;;  %p307_p4 = scmp.lt.s32.totalorder %s17_s10, %s17_s10 }
   0xb   :  { %p303_p3 = scmp.ne.s32.totalorder %s17_s10, %s302_s20  ;;  %p308_p5 = scmp.lt.s32.totalorder %s302_s20, %s302_s20 }
   0xd   :  { %p309_p6 = por %p308_p5, %p307_p4 }
   0xf   :  { %p310_p7 = pnand %p309_p6, %p303_p3 }
  0x11   :  { %313 = shalt.err (!%p310_p7)
}
  0x12   :  { %19 = dma.hbm_to_vmem [thread:$0]  %s435_s0, 128, %s17_s10, [#allocation4]  }
  0x13   :  { %s314_s25 = scalar_lea.hbm %s436_s1, 512 }
  0x14   :  { %p315_p8 = scmp.ne.s32.totalorder %s436_s1, %s314_s25  ;;  %p318_p9 = scmp.lt.u32.totalorder %s314_s25, %s436_s1 }
  0x16   :  { %p320_p10 = pnand %p318_p9, %p315_p8 }
  0x18   :  { %323 = shalt.err (!%p320_p10)
}
  0x19   :  { %s324_s30 = scalar_lea.vmem %s389_s12, 512  ;;  %p329_p12 = scmp.lt.s32.totalorder %s389_s12, %s389_s12 }
  0x1a   :  { %p325_p11 = scmp.ne.s32.totalorder %s389_s12, %s324_s30  ;;  %p330_p13 = scmp.lt.s32.totalorder %s324_s30, %s324_s30 }
  0x1c   :  { %p331_p0 = por %p330_p13, %p329_p12 }
  0x1e   :  { %p332_p1 = pnand %p331_p0, %p325_p11 }
  0x20   :  { %335 = shalt.err (!%p332_p1)
}
  0x21   :  { %s366_s0 = smov 128   ;;  %s367_s3 = smov 8  }
  0x22   :  { %31 = dma.hbm_to_vmem [thread:$0]  %s436_s1, 512, %s389_s12, [#allocation7], %s366_s0, %s366_s0, %s367_s3  }
  0x23   :  { %358 = dma.done.wait [#allocation4], 128  }
  0x24   :  { %359 = vsyncadd [#allocation4], 4294967168 }
  0x25   :  { %360 = dma.done.wait [#allocation7], 512  }
  0x26   :  { %361 = vsyncadd [#allocation7], 4294966784  ;;  %vm42_vm0 = vcmask 57344   ;;  %v368_v0 = vmov 0.0|0.0   ;;  %v369_v1 = vmov 0.0   ;;  %vm370_vm1 = vmmov 0  }
  0x27   :  { %275 = vmatprep.subr.bf16.mxu0 %v368_v0  ;;  %43 = vst.msk [vmem:[#allocation2] sm:$0x1] %vm42_vm0, %v369_v1  ;;  %272 = vmatprep.mubr.msk.f32.mxu0 %vm370_vm1, %v369_v1  ;;  %v45_v2 = vld [vmem:[#allocation6] sm:$0xff]  ;;  %v46_v3 = vld [vmem:[#allocation6 + $0x8] sm:$0xff]  ;;  %v47_v4 = vld [vmem:[#allocation6 + $0x10] sm:$0xff]  ;;  %vm49_vm2 = vcmask 261120   ;;  %v129_v14 = vlaneseq }
  0x28   :  { %v276_v5 = vpack.c.bf16 %v46_v3, %v45_v2  ;;  %v48_v6 = vld [vmem:[#allocation6 + $0x18] sm:$0xff]  ;;  %v371_v13 = vmov 0   ;;  %v372_v18 = vmov 1966171168   ;;  %s373_s1 = smov [#allocation8]  }
  0x29   :  { %v279_v7 = vpack.c.bf16 %v48_v6, %v47_v4  ;;  %v44_v8 = vld [vmem:[#allocation3] sm:$0xff]  ;;  %291 = vset.pattern.permute.xlu0 %v371_v13  ;;  %v130_v15 = vshrl.u32 %v129_v14, 7  ;;  %v214_v16 = vand.u32 127, %v129_v14  ;;  %v166_v19 = vunpack.c.l.s4 %v372_v18  ;;  %s248_s6 = sshll.u32 %s373_s1, 4  ;;  %s249_s6 = int_to_ptr.vmem [resolvable:$true] %s248_s6 }
  0x2a   :  { %277 = vmatpush3.bf16.msra.mxu0 %v276_v5  ;;  %s336_s7 = scalar_lea.vmem %s249_s6, 16  ;;  %s340_s8 = scalar_lea.vmem %s249_s6, 32 }
  0x2b   :  { %278 = vmatprep.subr.bf16.mxu0 %v368_v0  ;;  %v217_v17 = vsub.s32 %v214_v16, %v130_v15  ;;  %v167_v20 = vunpack.c.0.s8 %v166_v19  ;;  %v131_v21 = vsub.s32 0, %v130_v15  ;;  %v135_v22 = vsub.s32 1, %v130_v15  ;;  %p337_p2 = scmp.ne.s32.totalorder %s249_s6, %s336_s7  ;;  %p341_p3 = scmp.lt.s32.totalorder %s249_s6, %s249_s6 }
  0x2c   :  { %v139_v23 = vsub.s32 2, %v130_v15  ;;  %v143_v24 = vsub.s32 3, %v130_v15  ;;  %v147_v25 = vsub.s32 4, %v130_v15  ;;  %v151_v26 = vsub.s32 5, %v130_v15  ;;  %p342_p4 = scmp.lt.s32.totalorder %s340_s8, %s336_s7 }
  0x2d   :  { %v155_v27 = vsub.s32 6, %v130_v15  ;;  %v159_v28 = vsub.s32 7, %v130_v15  ;;  %v170_v30 = vsub.s32 %v167_v20, %v130_v15 }
  0x2e   :  { %280 = vmatpush3.bf16.msra.mxu0 %v279_v7  ;;  %v123_v55 = vld [vmem:[#allocation2] sm:$0x1]  ;;  %p343_p5 = por %p342_p4, %p341_p3 }
  0x30   :  { %p344_p6 = pnand %p343_p5, %p337_p2 }
  0x31   :  { %273 = vmatmul.mubr.msk.f32.vlgmr.msra.gmra.mrb[0].mxu0 %vm49_vm2, %v44_v8 }
 0x104   :  { %v119_v9 = vpop.f32.mrb[0].mxu0 }
 0x105   :  { %v124_v10 = vmul.f32 %v119_v9, %v119_v9  ;;  %v274_v11 = vpop.f32.mrb[1].mxu0 }
 0x107   :  { %v125_v12 = vsel %vm49_vm2, %v124_v10, 0.0 }
 0x108   :  { %126 = vadd.xlane.f32.xlu0 %v125_v12 }
 0x195   :  { %v127_v29 = vpop.xlane.xlu0 %126 }
 0x196   :  { %v132_v31 = vrot.slane %v127_v29, %v131_v21  ;;  %v136_v32 = vrot.slane %v127_v29, %v135_v22  ;;  %v140_v33 = vrot.slane %v127_v29, %v139_v23  ;;  %v144_v34 = vrot.slane %v127_v29, %v143_v24 }
 0x197   :  { %v148_v35 = vrot.slane %v127_v29, %v147_v25  ;;  %v152_v36 = vrot.slane %v127_v29, %v151_v26  ;;  %v156_v37 = vrot.slane %v127_v29, %v155_v27  ;;  %v160_v38 = vrot.slane %v127_v29, %v159_v28 }
 0x198   :  { %v161_v39 = vcombine.low %v132_v31, %v136_v32  ;;  %v162_v40 = vcombine.low %v140_v33, %v144_v34 }
 0x199   :  { %v163_v41 = vcombine.low %v148_v35, %v152_v36  ;;  %v164_v42 = vcombine.low %v156_v37, %v160_v38 }
 0x19a   :  { %v171_v43 = vrot.slane %v161_v39, %v170_v30  ;;  %v178_v44 = vrot.slane %v162_v40, %v170_v30 }
 0x19b   :  { %v185_v45 = vrot.slane %v163_v41, %v170_v30  ;;  %v192_v46 = vrot.slane %v164_v42, %v170_v30 }
 0x19c   :  { %v193_v47 = vcombine.low %v171_v43, %v178_v44 }
 0x19d   :  { %v194_v48 = vcombine.low %v185_v45, %v192_v46 }
 0x19e   :  { %v201_v49 = vrot.slane %v193_v47, %v170_v30 }
 0x19f   :  { %v208_v50 = vrot.slane %v194_v48, %v170_v30 }
 0x1a1   :  { %v209_v51 = vcombine.low %v201_v49, %v208_v50 }
 0x1a3   :  { %211 = vperm.xlu0 %291, %v209_v51  }
 0x222   :  { %v212_v52 = vpop.permute.xlu0 %211 }
 0x223   :  { %v218_v53 = vrot.slane %v212_v52, %v217_v17 }
 0x225   :  { %v225_v54 = vrot.slane %v218_v53, %v170_v30 }
 0x227   :  { %v232_v56 = vrot.slane %v225_v54, %v170_v30 }
 0x229   :  { %v234_v57 = vadd.f32 %v232_v56, %v123_v55 }
 0x22b   :  { %236 = vst.msk [vmem:[#allocation2] sm:$0x1] %vm42_vm0, %v234_v57 }
 0x232   :  { %v240_v58 = vld [vmem:[#allocation2] sm:$0x1] }
 0x233   :  { %241 = vst.msk [vmem:[#allocation8] sm:$0x1] %vm42_vm0, %v240_v58 }
 0x234   :  { %347 = shalt.err (!%p344_p6)
}
 0x235   :  { %s348_s11 = scalar_lea.hbm %s437_s2, 16 }
 0x236   :  { %p349_p7 = scmp.ne.s32.totalorder %s437_s2, %s348_s11  ;;  %p352_p8 = scmp.lt.u32.totalorder %s348_s11, %s437_s2 }
 0x238   :  { %p354_p9 = pnand %p352_p8, %p349_p7 }
 0x23a   :  { %357 = shalt.err (!%p354_p9)
}
 0x23b   :  { %251 = dma.vmem_to_hbm [thread:$0]  %s249_s6, 16, %s437_s2, [#allocation5]  }
 0x23c   :  { %362 = dma.done.wait [#allocation5], 16  }
 0x23d   :  { %363 = vsyncadd [#allocation5], 4294967280 }
 0x23e   :  { %255 = vsyncpa [#allocation4], 1 }
 0x23f   :  { %256 = vsyncpa [#allocation7], 1 }
 0x240   :  { %257 = vsyncpa [#allocation5], 1 }

</bundles_post_ra>
